<compile_context>
chip_gen: v7x
topology: tpu7x:2x2x1
jax: 0.10.0
libtpu: 0.0.40
codegen_flags: <defaults>
</compile_context>

<pallas_src>
import jax
import jax.numpy as jnp
from jax.experimental import pallas as pl
from jax.experimental.pallas import tpu as pltpu

BN_EPS = 1e-5


def _round_up(x, m):
    return (x + m - 1) // m * m


# ---------------------------------------------------------------------------
# Pass 1: streaming per-(b,c) sum of |x| over the flattened-spatial lane axis.
# Grid = (row_tiles, hw_tiles); HW is the innermost reduction ("arbitrary")
# axis, accumulated in an f32 VMEM scratch; the lane reduction rides the XLU.
# ---------------------------------------------------------------------------
def _abs_sum_kernel(x_ref, o_ref, acc_ref):
    k = pl.program_id(1)

    @pl.when(k == 0)
    def _():
        acc_ref[...] = jnp.zeros_like(acc_ref)

    x = x_ref[...].astype(jnp.float32)
    acc_ref[...] += jnp.sum(jnp.abs(x), axis=-1, keepdims=True)

    @pl.when(k == pl.num_programs(1) - 1)
    def _():
        o_ref[...] = acc_ref[...]


# ---------------------------------------------------------------------------
# Pass 2: streaming elementwise soft-threshold.
#   out = sign(x) * max(|x| - thresh_row, 0)
# thresh is fed as a (rows, 1) array whose index_map picks the matching row
# block, avoiding any (B, C, HW) broadcast materialization.
# ---------------------------------------------------------------------------
def _soft_threshold_kernel(x_ref, t_ref, o_ref):
    x = x_ref[...].astype(jnp.float32)
    t = t_ref[...]                       # (row_tile, 1), broadcasts over lanes
    n_sub = jnp.maximum(jnp.abs(x) - t, 0.0)
    # thresh >= 0 (avg >= 0, sigmoid > 0), so this matches sign(x)*n_sub,
    # including x == 0, while using 2 VPU ops instead of a sign() chain.
    out = jnp.where(x >= 0.0, n_sub, -n_sub)
    o_ref[...] = out.astype(o_ref.dtype)


def shrinkage_forward(x_nchw, params, *, max_row_tile=256, max_hw_tile=2048):
    B, C, H, W = x_nchw.shape
    HW = H * W
    BC = B * C
    out_dtype = x_nchw.dtype

    x = x_nchw.reshape(BC, HW)

    # Row tile: multiple of 8 (sublane); lane tile: multiple of 128 (lane).
    row_tile = min(max_row_tile, _round_up(BC, 8))
    rows_p = _round_up(BC, row_tile)
    hw_tile = min(max_hw_tile, _round_up(HW, 128))
    hw_p = _round_up(HW, hw_tile)

    if rows_p != BC or hw_p != HW:
        # Zero padding: |0| contributes nothing to the sum, and padded outputs
        # are sliced away below.
        x = jnp.pad(x, ((0, rows_p - BC), (0, hw_p - HW)))

    grid = (rows_p // row_tile, hw_p // hw_tile)

    # ---- pass 1: sum(|x|) per row --------------------------------------------
    sums = pl.pallas_call(
        _abs_sum_kernel,
        out_shape=jax.ShapeDtypeStruct((rows_p, 1), jnp.float32),
        grid=grid,
        in_specs=[pl.BlockSpec((row_tile, hw_tile), lambda i, k: (i, k))],
        out_specs=pl.BlockSpec((row_tile, 1), lambda i, k: (i, 0)),
        scratch_shapes=[pltpu.VMEM((row_tile, 1), jnp.float32)],
        compiler_params=pltpu.CompilerParams(
            dimension_semantics=("parallel", "arbitrary"),
            vmem_limit_bytes=64 << 20,
        ),
    )(x)

    # ---- tiny MLP (fc pipeline) in plain JAX — negligible FLOPs --------------
    avg = (sums[:BC, 0] / jnp.float32(HW)).reshape(B, C)            # (B, C)
    h = avg @ params["w1"] + params["b1"]
    h = (h - params["mean"]) * jax.lax.rsqrt(params["var"] + BN_EPS) \
        * params["gamma"] + params["beta"]
    h = jnp.maximum(h, 0.0)
    s = jax.nn.sigmoid(h @ params["w2"] + params["b2"])             # (B, 1)
    thresh = (avg * s).reshape(BC, 1).astype(jnp.float32)           # (B*C, 1)
    if rows_p != BC:
        thresh = jnp.pad(thresh, ((0, rows_p - BC), (0, 0)))

    # ---- pass 2: soft threshold ----------------------------------------------
    out = pl.pallas_call(
        _soft_threshold_kernel,
        out_shape=jax.ShapeDtypeStruct((rows_p, hw_p), out_dtype),
        grid=grid,
        in_specs=[pl.BlockSpec((row_tile, hw_tile), lambda i, j: (i, j)),
                  pl.BlockSpec((row_tile, 1), lambda i, j: (i, 0))],
        out_specs=pl.BlockSpec((row_tile, hw_tile), lambda i, j: (i, j)),
        compiler_params=pltpu.CompilerParams(
            dimension_semantics=("parallel", "parallel"),
            vmem_limit_bytes=64 << 20,
        ),
    )(x, thresh)

    return out[:BC, :HW].reshape(B, C, H, W)


def init_params(key, channel):
    k1, k2, k3, k4 = jax.random.split(key, 4)
    scale = 1.0 / jnp.sqrt(jnp.float32(channel))
    return {
        # Linear(channel, channel): stored as (in, out)
        "w1": jax.random.normal(k1, (channel, channel), jnp.float32) * scale,
        "b1": jax.random.normal(k2, (1, channel), jnp.float32) * 0.01,
        # BatchNorm1d(channel) as freshly initialized, inference mode
        "gamma": jnp.ones((1, channel), jnp.float32),
        "beta": jnp.zeros((1, channel), jnp.float32),
        "mean": jnp.zeros((1, channel), jnp.float32),
        "var": jnp.ones((1, channel), jnp.float32),
        # Linear(channel, 1): stored as (in, out)
        "w2": jax.random.normal(k3, (channel, 1), jnp.float32) * scale,
        "b2": jax.random.normal(k4, (1, 1), jnp.float32) * 0.01,
    }


def shrinkage_reference(x_nchw, params):
    """Pure-JAX reference with identical semantics (for sanity checking)."""
    B, C, H, W = x_nchw.shape
    x = x_nchw.astype(jnp.float32)
    x_abs = jnp.abs(x)
    avg = jnp.mean(x_abs.reshape(B, C, H * W), axis=-1)              # (B, C)
    h = avg @ params["w1"] + params["b1"]
    h = (h - params["mean"]) * jax.lax.rsqrt(params["var"] + BN_EPS) \
        * params["gamma"] + params["beta"]
    h = jnp.maximum(h, 0.0)
    s = jax.nn.sigmoid(h @ params["w2"] + params["b2"])              # (B, 1)
    thresh = (avg * s)[:, :, None, None]                             # (B, C, 1, 1)
    n_sub = jnp.maximum(x_abs - thresh, 0.0)
    return (jnp.sign(x) * n_sub).astype(x_nchw.dtype)


if __name__ == "__main__":
    B, C, H, W = 2, 4, 16, 16
    key = jax.random.PRNGKey(0)
    kx, kp = jax.random.split(key)
    x = jax.random.normal(kx, (B, C, H, W), jnp.float32)
    params = init_params(kp, C)

    out = shrinkage_forward(x, params)
    out = jax.block_until_ready(out)

    ref = shrinkage_reference(x, params)
    assert out.shape == (B, C, H, W)
    assert out.dtype == x.dtype
    assert jnp.allclose(out, ref, atol=1e-5, rtol=1e-5), \
        "Pallas kernel mismatch vs reference"

    print("KERNEL_OK")
</pallas_src>

<mosaic_0001>
module attributes {stable_mosaic.version = 11 : i64} {
  func.func @_abs_sum_kernel(%arg0: i32, %arg1: i32, %arg2: memref<8x256xf32, #tpu.memory_space<vmem>>, %arg3: memref<8x1xf32, #tpu.memory_space<vmem>>, %arg4: memref<8x1xf32, #tpu.memory_space<vmem>>) attributes {dimension_semantics = [#tpu.dimension_semantics<parallel>, #tpu.dimension_semantics<arbitrary>], iteration_bounds = array<i64: 1, 1>, scalar_prefetch = 0 : i64, scratch_operands = 1 : i64, tpu.core_type = #tpu.core_type<tc>, window_params = [{transform_indices = @transform_0, window_bounds = array<i64: 8, 256>}, {transform_indices = @transform_1, window_bounds = array<i64: 8, 1>}]} {
    %c0_i32 = arith.constant 0 : i32
    %0 = arith.cmpi eq, %arg1, %c0_i32 : i32
    %1 = arith.extui %0 : i1 to i32
    %c0_i32_0 = arith.constant 0 : i32
    %2 = arith.cmpi ne, %1, %c0_i32_0 : i32
    scf.if %2 {
      %cst_8 = arith.constant 0.000000e+00 : f32
      %13 = vector.broadcast %cst_8 : f32 to vector<8x1xf32>
      %c0_9 = arith.constant 0 : index
      %c0_10 = arith.constant 0 : index
      %14 = vector.load %arg4[%c0_9, %c0_10] : memref<8x1xf32, #tpu.memory_space<vmem>>, vector<8x1xf32>
      tpu.vector_store %arg4[%c0_9, %c0_10], %13 {strides = array<i32>} : memref<8x1xf32, #tpu.memory_space<vmem>>, vector<8x1xf32>,
    } else {
    }
    %c0 = arith.constant 0 : index
    %c0_1 = arith.constant 0 : index
    %3 = vector.load %arg2[%c0, %c0_1] : memref<8x256xf32, #tpu.memory_space<vmem>>, vector<8x256xf32>
    %c0_2 = arith.constant 0 : index
    %c0_3 = arith.constant 0 : index
    %4 = vector.load %arg4[%c0_2, %c0_3] : memref<8x1xf32, #tpu.memory_space<vmem>>, vector<8x1xf32>
    %5 = math.absf %3 : vector<8x256xf32>
    %cst = arith.constant dense<0.000000e+00> : vector<8xf32>
    %6 = vector.multi_reduction <add>, %5, %cst [1] : vector<8x256xf32> to vector<8xf32>
    %7 = vector.shape_cast %6 : vector<8xf32> to vector<8x1xf32>
    %8 = arith.addf %4, %7 : vector<8x1xf32>
    %c0_4 = arith.constant 0 : index
    %c0_5 = arith.constant 0 : index
    %9 = vector.load %arg4[%c0_4, %c0_5] : memref<8x1xf32, #tpu.memory_space<vmem>>, vector<8x1xf32>
    tpu.vector_store %arg4[%c0_4, %c0_5], %8 {strides = array<i32>} : memref<8x1xf32, #tpu.memory_space<vmem>>, vector<8x1xf32>,
    %c0_i32_6 = arith.constant 0 : i32
    %10 = arith.cmpi eq, %arg1, %c0_i32_6 : i32
    %11 = arith.extui %10 : i1 to i32
    %c0_i32_7 = arith.constant 0 : i32
    %12 = arith.cmpi ne, %11, %c0_i32_7 : i32
    scf.if %12 {
      %c0_8 = arith.constant 0 : index
      %c0_9 = arith.constant 0 : index
      %13 = vector.load %arg4[%c0_8, %c0_9] : memref<8x1xf32, #tpu.memory_space<vmem>>, vector<8x1xf32>
      %c0_10 = arith.constant 0 : index
      %c0_11 = arith.constant 0 : index
      %14 = vector.load %arg3[%c0_10, %c0_11] : memref<8x1xf32, #tpu.memory_space<vmem>>, vector<8x1xf32>
      tpu.vector_store %arg3[%c0_10, %c0_11], %13 {strides = array<i32>} : memref<8x1xf32, #tpu.memory_space<vmem>>, vector<8x1xf32>,
    } else {
    }
    return
  }
  func.func @transform_0(%arg0: i32, %arg1: i32) -> (i32, i32) {
    %c0_i32 = arith.constant 0 : i32
    return %arg0, %arg1 : i32, i32
  }
  func.func @transform_1(%arg0: i32, %arg1: i32) -> (i32, i32) {
    %c0_i32 = arith.constant 0 : i32
    %c0_i32_0 = arith.constant 0 : i32
    return %arg0, %c0_i32 : i32, i32
  }
}

</mosaic_0001>

<bundles_post_ra>
// kernel: tpu_custom_call.1
= control target key start
LH: loop header
LB: loop body
LE: loop exit
PB: predicated region body
PF: predicated region fallthrough
CT: control target
= control target key end

     0   :  { %6 = vsyncpa [#allocation4], 0  ;;  %s149_s0 = inlined_call_operand.hbm [shape: f32[8,256], index: 0, kind: input, shape index: {}]   ;;  %s150_s1 = inlined_call_operand.hbm [shape: f32[8,1], index: 1, kind: output, shape index: {}]  }
   0x1   :  { %7 = vsyncpa [#allocation5], 0  ;;  %s109_s6 = smov [#allocation3]   ;;  %s61_s10 = scalar_lea.hbm %s149_s0, 256 }
   0x2   :  { %s14_s7 = sshll.u32 %s109_s6, 4  ;;  %p62_p0 = scmp.ne.s32.totalorder %s149_s0, %s61_s10  ;;  %s15_s7 = int_to_ptr.vmem [resolvable:$true] %s14_s7 }
   0x3   :  { %p65_p1 = scmp.lt.u32.totalorder %s61_s10, %s149_s0 }
   0x5   :  { %p67_p2 = pnand %p65_p1, %p62_p0 }
   0x7   :  { %70 = shalt.err (!%p67_p2)
}
   0x8   :  { %s71_s15 = scalar_lea.vmem %s15_s7, 256  ;;  %p76_p4 = scmp.lt.s32.totalorder %s15_s7, %s15_s7 }
   0x9   :  { %p72_p3 = scmp.ne.s32.totalorder %s15_s7, %s71_s15  ;;  %p77_p5 = scmp.lt.s32.totalorder %s71_s15, %s71_s15 }
   0xb   :  { %p78_p6 = por %p77_p5, %p76_p4 }
   0xd   :  { %p79_p7 = pnand %p78_p6, %p72_p3 }
   0xf   :  { %82 = shalt.err (!%p79_p7)
}
  0x10   :  { %17 = dma.hbm_to_vmem [thread:$0]  %s149_s0, 256, %s15_s7, [#allocation4]  }
  0x11   :  { %105 = dma.done.wait [#allocation4], 256  }
  0x12   :  { %106 = vsyncadd [#allocation4], 4294967040  ;;  %vm25_vm0 = vcmask 7168   ;;  %v110_v0 = vmov 0.0   ;;  %v27_v1 = vld [vmem:[#allocation3] sm:$0xff]  ;;  %v28_v2 = vld [vmem:[#allocation3 + $0x8] sm:$0xff] }
  0x13   :  { %26 = vst.msk [vmem:[#allocation2] sm:$0xff] %vm25_vm0, %v110_v0  ;;  %v30_v3 = vand.u32 2147483647, %v27_v1  ;;  %v31_v4 = vand.u32 2147483647, %v28_v2  ;;  %s111_s18 = smov [#allocation6]  }
  0x14   :  { %s49_s19 = sshll.u32 %s111_s18, 4  ;;  %s50_s19 = int_to_ptr.vmem [resolvable:$true] %s49_s19 }
  0x15   :  { %v32_v5 = vadd.f32 %v31_v4, %v30_v3  ;;  %s83_s0 = scalar_lea.vmem %s50_s19, 128  ;;  %p88_p9 = scmp.lt.s32.totalorder %s50_s19, %s50_s19 }
  0x16   :  { %p84_p8 = scmp.ne.s32.totalorder %s50_s19, %s83_s0  ;;  %p89_p10 = scmp.lt.s32.totalorder %s83_s0, %s83_s0 }
  0x17   :  { %33 = vadd.xlane.f32.xlu0 %v32_v5 }
  0x18   :  { %p90_p11 = por %p89_p10, %p88_p9 }
  0x1a   :  { %v29_v6 = vld [vmem:[#allocation2] sm:$0xff]  ;;  %p91_p12 = pnand %p90_p11, %p84_p8 }
  0xa4   :  { %v34_v7 = vpop.xlane.xlu0 %33 }
  0xa5   :  { %v35_v8 = vadd.f32 %v34_v7, %v29_v6 }
  0xa7   :  { %37 = vst.msk [vmem:[#allocation2] sm:$0xff] %vm25_vm0, %v35_v8 }
  0xae   :  { %v41_v9 = vld [vmem:[#allocation2] sm:$0xff] }
  0xaf   :  { %42 = vst.msk [vmem:[#allocation6] sm:$0xff] %vm25_vm0, %v41_v9 }
  0xb0   :  { %94 = shalt.err (!%p91_p12)
}
  0xb1   :  { %s95_s22 = scalar_lea.hbm %s150_s1, 128 }
  0xb2   :  { %p96_p13 = scmp.ne.s32.totalorder %s150_s1, %s95_s22  ;;  %p99_p0 = scmp.lt.u32.totalorder %s95_s22, %s150_s1 }
  0xb4   :  { %p101_p1 = pnand %p99_p0, %p96_p13 }
  0xb6   :  { %104 = shalt.err (!%p101_p1)
}
  0xb7   :  { %52 = dma.vmem_to_hbm [thread:$0]  %s50_s19, 128, %s150_s1, [#allocation5]  }
  0xb8   :  { %107 = dma.done.wait [#allocation5], 128  }
  0xb9   :  { %108 = vsyncadd [#allocation5], 4294967168 }
  0xba   :  { %56 = vsyncpa [#allocation4], 1 }
  0xbb   :  { %57 = vsyncpa [#allocation5], 1 }

</bundles_post_ra>
